<compile_context>
chip_gen: v5e
topology: v5e:2x2
jax: 0.10.0
libtpu: 0.0.40
codegen_flags: <defaults>
</compile_context>

<pallas_src>
import functools

import jax
import jax.numpy as jnp
import numpy as np
from jax.experimental import pallas as pl
from jax.experimental.pallas import tpu as pltpu


# --------------------------------------------------------------------------
# Host-side helpers
# --------------------------------------------------------------------------
def _bilinear_matrix(out_size: int, in_size: int) -> np.ndarray:
    """Interpolation matrix W (out_size, in_size) matching
    F.interpolate(mode='bilinear', align_corners=False) along one axis."""
    W = np.zeros((out_size, in_size), dtype=np.float32)
    scale = in_size / out_size
    for i in range(out_size):
        src = (i + 0.5) * scale - 0.5
        src = max(src, 0.0)  # PyTorch clamps negative source coords to 0
        i0 = int(np.floor(src))
        i0 = min(i0, in_size - 1)
        i1 = min(i0 + 1, in_size - 1)
        lam = src - i0
        W[i, i0] += 1.0 - lam
        W[i, i1] += lam
    return W


@functools.lru_cache(maxsize=None)
def _interp_matrices(out_h: int, out_w: int, in_h: int, in_w: int):
    """Cached (Hout, Hf) height matrix and pre-transposed (Wf, Wout) width matrix."""
    wh = jnp.asarray(_bilinear_matrix(out_h, in_h))                            # (Hout, Hf)
    wwt = jnp.asarray(np.ascontiguousarray(_bilinear_matrix(out_w, in_w).T))   # (Wf, Wout)
    return wh, wwt


@functools.lru_cache(maxsize=None)
def _vmem_budget_bytes() -> int:
    """Generation-aware scoped-VMEM budget for the pallas_calls.

    v5e/v6e have 128 MiB VMEM, v7x has 64 MiB per TensorCore.  Leave ~25%
    headroom for compiler-internal scratch and clamp to a sane range."""
    cap = 64 << 20  # conservative default = v7x per-TC capacity
    try:
        info = pltpu.get_tpu_info()
        cap = int(getattr(info, "vmem_capacity_bytes", cap)) or cap
    except Exception:
        pass
    return int(min(max(cap * 3 // 4, 32 << 20), 96 << 20))


def _pick_layer_tiles(B: int, C: int, HW: int, itemsize: int, budget: int):
    """(batch_tile, hw_tile) for kernel 1.

    Per grid-step footprint is estimated as:
        2 inputs x 2 pipeline buffers x block_in        (4 * itemsize / element)
      + ~3 f32 working copies of the block in-kernel     (12 bytes / element)
      + double-buffered f32 output block                 (negligible)
    Blocks end up at several MiB per input (the review's 4-8 MiB regime) on
    every generation while staying under `budget`."""
    per_elem = 4 * itemsize + 3 * 4 + 1          # bytes per (bt * C * hw) element (+slack)
    max_elems = max(C * 128, budget // per_elem)

    if C * HW <= max_elems:
        hw_tile = HW
        bt = max(1, min(B, max_elems // (C * HW)))
        while B % bt:
            bt -= 1
    else:
        bt = 1
        if HW % 128 == 0:
            # Largest lane-aligned (multiple of 128) divisor of HW that fits.
            hw_tile = 128
            for cand in range(128, HW + 1, 128):
                if HW % cand == 0 and cand * C <= max_elems:
                    hw_tile = cand
        else:
            # Cannot split the lane dim cleanly; keep it whole and rely on the
            # raised vmem_limit_bytes.
            hw_tile = HW
    return bt, hw_tile


def _pick_resize_batch_tile(B, Hf, Wf, Hout, Wout, budget):
    """Batch tile for kernel 2: as many items per grid step as fit comfortably
    (capped so the static in-kernel unroll stays small)."""
    per_item = 2 * 4 * (Hf * Wf + Hout * Wout) + 4 * (Hf * Wout)  # dbl-buffered io + tmp
    bt = max(1, min(B, 16, budget // max(per_item, 1)))
    while B % bt:
        bt -= 1
    return bt


# --------------------------------------------------------------------------
# Kernel 1: lane-dense layer map (cosine-identity form)
# --------------------------------------------------------------------------
def _layer_map_kernel(ft_ref, fs_ref, lm_ref):
    # ft_ref / fs_ref : (bt, C, hw_tile) VMEM tiles (lane-dense on hw)
    # lm_ref          : (bt, 1, hw_tile) float32
    eps = 1e-12
    ft = ft_ref[...].astype(jnp.float32)
    fs = fs_ref[...].astype(jnp.float32)

    # Three channel reductions replace normalize + diff + square:
    #   0.5*||ft/nt - fs/ns||^2 = 0.5*(s_tt/nt^2 + s_ss/ns^2) - s_ts/(nt*ns)
    s_tt = jnp.sum(ft * ft, axis=1, keepdims=True)   # (bt, 1, hw)
    s_ss = jnp.sum(fs * fs, axis=1, keepdims=True)
    s_ts = jnp.sum(ft * fs, axis=1, keepdims=True)

    # Clamp matches F.normalize: x / max(||x||, eps).
    inv_t = 1.0 / jnp.maximum(jnp.sqrt(s_tt), eps)
    inv_s = 1.0 / jnp.maximum(jnp.sqrt(s_ss), eps)

    lm_ref[...] = 0.5 * (s_tt * inv_t * inv_t + s_ss * inv_s * inv_s) - s_ts * (inv_t * inv_s)


# --------------------------------------------------------------------------
# Kernel 2: batched bilinear resize via MXU matmuls (lane-dense on Wout)
# --------------------------------------------------------------------------
def _resize_kernel(lm_ref, wh_ref, wwt_ref, out_ref):
    # lm_ref  : (bt, 1, Hf, Wf)
    # wh_ref  : (Hout, Hf)   height interpolation matrix (tiny, loaded once)
    # wwt_ref : (Wf, Wout)   width interpolation matrix, pre-transposed on host
    # out_ref : (bt, 1, Hout, Wout)
    wh = wh_ref[...]
    wwt = wwt_ref[...]
    for b in range(lm_ref.shape[0]):  # static unroll; bt is small by construction
        lm = lm_ref[b, 0]                                                    # (Hf, Wf)
        tmp = jnp.dot(lm, wwt, preferred_element_type=jnp.float32)           # (Hf, Wout)
        out = jnp.dot(wh, tmp, preferred_element_type=jnp.float32)           # (Hout, Wout)
        out_ref[b, 0] = out.astype(out_ref.dtype)


# --------------------------------------------------------------------------
# Wrapper
# --------------------------------------------------------------------------
@jax.jit
def _forward(ft, fs, wh, wwt):
    B, C, Hf, Wf = ft.shape
    Hout, Wout = wh.shape[0], wwt.shape[1]
    HW = Hf * Wf
    itemsize = jnp.dtype(ft.dtype).itemsize
    budget = _vmem_budget_bytes()

    # Free, contiguous reshapes to present a lane-dense view.
    ftf = ft.reshape(B, C, HW)
    fsf = fs.reshape(B, C, HW)

    bt, hw_tile = _pick_layer_tiles(B, C, HW, itemsize, budget)

    lm_cost = pl.CostEstimate(
        flops=int(B * (6 * C * HW + 12 * HW)),
        transcendentals=int(2 * B * HW),
        bytes_accessed=int(2 * B * C * HW * itemsize + B * HW * 4),
    )
    lm = pl.pallas_call(
        _layer_map_kernel,
        out_shape=jax.ShapeDtypeStruct((B, 1, HW), jnp.float32),
        grid=(B // bt, HW // hw_tile),
        in_specs=[
            pl.BlockSpec((bt, C, hw_tile), lambda b, h: (b, 0, h)),
            pl.BlockSpec((bt, C, hw_tile), lambda b, h: (b, 0, h)),
        ],
        out_specs=pl.BlockSpec((bt, 1, hw_tile), lambda b, h: (b, 0, h)),
        compiler_params=pltpu.CompilerParams(
            dimension_semantics=("parallel", "parallel"),
            vmem_limit_bytes=budget,
        ),
        cost_estimate=lm_cost,
    )(ftf, fsf)

    # Contiguous reshape (no data movement) back to 2-D spatial layout.
    lm4 = lm.reshape(B, 1, Hf, Wf)

    bt2 = _pick_resize_batch_tile(B, Hf, Wf, Hout, Wout, budget)
    rs_cost = pl.CostEstimate(
        flops=int(2 * B * (Hf * Wf * Wout + Hout * Hf * Wout)),
        transcendentals=0,
        bytes_accessed=int(B * HW * 4 + B * Hout * Wout * 4 + (Hout * Hf + Wf * Wout) * 4),
    )
    out = pl.pallas_call(
        _resize_kernel,
        out_shape=jax.ShapeDtypeStruct((B, 1, Hout, Wout), jnp.float32),
        grid=(B // bt2,),
        in_specs=[
            pl.BlockSpec((bt2, 1, Hf, Wf), lambda b: (b, 0, 0, 0)),
            pl.BlockSpec((Hout, Hf), lambda b: (0, 0)),
            pl.BlockSpec((Wf, Wout), lambda b: (0, 0)),
        ],
        out_specs=pl.BlockSpec((bt2, 1, Hout, Wout), lambda b: (b, 0, 0, 0)),
        compiler_params=pltpu.CompilerParams(
            dimension_semantics=("parallel",),
            vmem_limit_bytes=budget,
        ),
        cost_estimate=rs_cost,
    )(lm4, wh, wwt)
    return out


def anomaly_map_generator(ft, fs, img_size):
    """JAX/Pallas equivalent of AnomalyMapGenerator.forward.

    ft, fs   : (B, C, Hf, Wf) feature maps (NCHW), f32 or bf16
    img_size : tuple (b, c, h, w) — only h, w are used (as in the torch module)
    returns  : (B, 1, h, w) anomaly map (float32)
    """
    _, _, out_h, out_w = img_size
    _, _, Hf, Wf = ft.shape
    wh, wwt = _interp_matrices(int(out_h), int(out_w), int(Hf), int(Wf))
    return _forward(ft, fs, wh, wwt)


# --------------------------------------------------------------------------
# Pure-JAX reference for correctness checking
# --------------------------------------------------------------------------
def _reference(ft, fs, img_size):
    _, _, out_h, out_w = img_size
    eps = 1e-12
    ft = ft.astype(jnp.float32)
    fs = fs.astype(jnp.float32)
    ft_n = ft / jnp.maximum(jnp.linalg.norm(ft, axis=1, keepdims=True), eps)
    fs_n = fs / jnp.maximum(jnp.linalg.norm(fs, axis=1, keepdims=True), eps)
    lm = 0.5 * jnp.sum((ft_n - fs_n) ** 2, axis=1, keepdims=True)  # (B,1,Hf,Wf)
    Hf, Wf = lm.shape[-2:]
    wh = jnp.asarray(_bilinear_matrix(out_h, Hf))
    ww = jnp.asarray(_bilinear_matrix(out_w, Wf))
    return jnp.einsum("oh,bchw,pw->bcop", wh, lm, ww)


if __name__ == "__main__":
    key = jax.random.PRNGKey(0)
    k1, k2 = jax.random.split(key)

    B, C, Hf, Wf = 2, 4, 16, 16
    img_size = (B, 3, 32, 32)  # (b, c, h, w) — only h, w matter

    ft = jax.random.normal(k1, (B, C, Hf, Wf), dtype=jnp.float32)
    fs = jax.random.normal(k2, (B, C, Hf, Wf), dtype=jnp.float32)

    out = anomaly_map_generator(ft, fs, img_size)
    out = jax.block_until_ready(out)

    ref = _reference(ft, fs, img_size)
    assert out.shape == (B, 1, 32, 32), out.shape
    assert jnp.allclose(out, ref, atol=1e-4, rtol=1e-4), (
        float(jnp.max(jnp.abs(out - ref)))
    )

    print("KERNEL_OK")
</pallas_src>

<mosaic_0001>
module attributes {stable_mosaic.version = 11 : i64} {
  func.func @_layer_map_kernel(%arg0: i32, %arg1: i32, %arg2: memref<2x4x256xf32, #tpu.memory_space<vmem>>, %arg3: memref<2x4x256xf32, #tpu.memory_space<vmem>>, %arg4: memref<2x1x256xf32, #tpu.memory_space<vmem>>) attributes {dimension_semantics = [#tpu.dimension_semantics<parallel>, #tpu.dimension_semantics<parallel>], iteration_bounds = array<i64: 1, 1>, scalar_prefetch = 0 : i64, scratch_operands = 0 : i64, tpu.core_type = #tpu.core_type<tc>, window_params = [{transform_indices = @transform_0, window_bounds = array<i64: 2, 4, 256>}, {transform_indices = @transform_1, window_bounds = array<i64: 2, 4, 256>}, {transform_indices = @transform_2, window_bounds = array<i64: 2, 1, 256>}]} {
    %c0 = arith.constant 0 : index
    %c0_0 = arith.constant 0 : index
    %c0_1 = arith.constant 0 : index
    %0 = vector.load %arg2[%c0, %c0_0, %c0_1] : memref<2x4x256xf32, #tpu.memory_space<vmem>>, vector<2x4x256xf32>
    %c0_2 = arith.constant 0 : index
    %c0_3 = arith.constant 0 : index
    %c0_4 = arith.constant 0 : index
    %1 = vector.load %arg3[%c0_2, %c0_3, %c0_4] : memref<2x4x256xf32, #tpu.memory_space<vmem>>, vector<2x4x256xf32>
    %2 = arith.mulf %0, %0 : vector<2x4x256xf32>
    %cst = arith.constant dense<0.000000e+00> : vector<2x256xf32>
    %3 = vector.multi_reduction <add>, %2, %cst [1] : vector<2x4x256xf32> to vector<2x256xf32>
    %4 = vector.shape_cast %3 : vector<2x256xf32> to vector<2x1x256xf32>
    %5 = arith.mulf %1, %1 : vector<2x4x256xf32>
    %cst_5 = arith.constant dense<0.000000e+00> : vector<2x256xf32>
    %6 = vector.multi_reduction <add>, %5, %cst_5 [1] : vector<2x4x256xf32> to vector<2x256xf32>
    %7 = vector.shape_cast %6 : vector<2x256xf32> to vector<2x1x256xf32>
    %8 = arith.mulf %0, %1 : vector<2x4x256xf32>
    %cst_6 = arith.constant dense<0.000000e+00> : vector<2x256xf32>
    %9 = vector.multi_reduction <add>, %8, %cst_6 [1] : vector<2x4x256xf32> to vector<2x256xf32>
    %10 = vector.shape_cast %9 : vector<2x256xf32> to vector<2x1x256xf32>
    %11 = math.sqrt %4 : vector<2x1x256xf32>
    %cst_7 = arith.constant 9.99999996E-13 : f32
    %12 = vector.broadcast %cst_7 : f32 to vector<2x1x256xf32>
    %13 = arith.maximumf %11, %12 : vector<2x1x256xf32>
    %cst_8 = arith.constant 1.000000e+00 : f32
    %14 = vector.broadcast %cst_8 : f32 to vector<2x1x256xf32>
    %15 = arith.divf %14, %13 : vector<2x1x256xf32>
    %16 = math.sqrt %7 : vector<2x1x256xf32>
    %cst_9 = arith.constant 9.99999996E-13 : f32
    %17 = vector.broadcast %cst_9 : f32 to vector<2x1x256xf32>
    %18 = arith.maximumf %16, %17 : vector<2x1x256xf32>
    %cst_10 = arith.constant 1.000000e+00 : f32
    %19 = vector.broadcast %cst_10 : f32 to vector<2x1x256xf32>
    %20 = arith.divf %19, %18 : vector<2x1x256xf32>
    %21 = arith.mulf %4, %15 : vector<2x1x256xf32>
    %22 = arith.mulf %21, %15 : vector<2x1x256xf32>
    %23 = arith.mulf %7, %20 : vector<2x1x256xf32>
    %24 = arith.mulf %23, %20 : vector<2x1x256xf32>
    %25 = arith.addf %22, %24 : vector<2x1x256xf32>
    %cst_11 = arith.constant 5.000000e-01 : f32
    %26 = vector.broadcast %cst_11 : f32 to vector<2x1x256xf32>
    %27 = arith.mulf %26, %25 : vector<2x1x256xf32>
    %28 = arith.mulf %15, %20 : vector<2x1x256xf32>
    %29 = arith.mulf %10, %28 : vector<2x1x256xf32>
    %30 = arith.subf %27, %29 : vector<2x1x256xf32>
    %c0_12 = arith.constant 0 : index
    %c0_13 = arith.constant 0 : index
    %c0_14 = arith.constant 0 : index
    %31 = vector.load %arg4[%c0_12, %c0_13, %c0_14] : memref<2x1x256xf32, #tpu.memory_space<vmem>>, vector<2x1x256xf32>
    tpu.vector_store %arg4[%c0_12, %c0_13, %c0_14], %30 {strides = array<i32>} : memref<2x1x256xf32, #tpu.memory_space<vmem>>, vector<2x1x256xf32>,
    return
  }
  func.func @transform_0(%arg0: i32, %arg1: i32) -> (i32, i32, i32) {
    %c0_i32 = arith.constant 0 : i32
    %c0_i32_0 = arith.constant 0 : i32
    return %arg0, %c0_i32, %arg1 : i32, i32, i32
  }
  func.func @transform_1(%arg0: i32, %arg1: i32) -> (i32, i32, i32) {
    %c0_i32 = arith.constant 0 : i32
    %c0_i32_0 = arith.constant 0 : i32
    return %arg0, %c0_i32, %arg1 : i32, i32, i32
  }
  func.func @transform_2(%arg0: i32, %arg1: i32) -> (i32, i32, i32) {
    %c0_i32 = arith.constant 0 : i32
    %c0_i32_0 = arith.constant 0 : i32
    return %arg0, %c0_i32, %arg1 : i32, i32, i32
  }
}

module attributes {stable_mosaic.version = 11 : i64} {
  func.func @_resize_kernel(%arg0: i32, %arg1: memref<2x1x16x16xf32, #tpu.memory_space<vmem>>, %arg2: memref<32x16xf32, #tpu.memory_space<vmem>>, %arg3: memref<16x32xf32, #tpu.memory_space<vmem>>, %arg4: memref<2x1x32x32xf32, #tpu.memory_space<vmem>>) attributes {dimension_semantics = [#tpu.dimension_semantics<parallel>], iteration_bounds = array<i64: 1>, scalar_prefetch = 0 : i64, scratch_operands = 0 : i64, tpu.core_type = #tpu.core_type<tc>, window_params = [{transform_indices = @transform_0, window_bounds = array<i64: 2, 1, 16, 16>}, {pipeline_mode = #tpu.pipeline_mode<synchronous>, transform_indices = @transform_1, window_bounds = array<i64: 32, 16>}, {pipeline_mode = #tpu.pipeline_mode<synchronous>, transform_indices = @transform_2, window_bounds = array<i64: 16, 32>}, {transform_indices = @transform_3, window_bounds = array<i64: 2, 1, 32, 32>}]} {
    %c0 = arith.constant 0 : index
    %c0_0 = arith.constant 0 : index
    %0 = vector.load %arg2[%c0, %c0_0] : memref<32x16xf32, #tpu.memory_space<vmem>>, vector<32x16xf32>
    %c0_1 = arith.constant 0 : index
    %c0_2 = arith.constant 0 : index
    %1 = vector.load %arg3[%c0_1, %c0_2] : memref<16x32xf32, #tpu.memory_space<vmem>>, vector<16x32xf32>
    %c0_3 = arith.constant 0 : index
    %c0_4 = arith.constant 0 : index
    %c0_5 = arith.constant 0 : index
    %c0_6 = arith.constant 0 : index
    %2 = vector.load %arg1[%c0_3, %c0_4, %c0_5, %c0_6] : memref<2x1x16x16xf32, #tpu.memory_space<vmem>>, vector<1x1x16x16xf32>
    %3 = vector.shape_cast %2 : vector<1x1x16x16xf32> to vector<16x16xf32>
    %cst = arith.constant dense<0.000000e+00> : vector<16x32xf32>
    %4 = tpu.matmul %3, %1, %cst {dimension_numbers = #tpu.dot_dimension_numbers<[1], [0], [0], [1], [0, 0, 1, 1], [], []>} : vector<16x16xf32>, vector<16x32xf32>, vector<16x32xf32> -> vector<16x32xf32>
    %cst_7 = arith.constant dense<0.000000e+00> : vector<32x32xf32>
    %5 = tpu.matmul %0, %4, %cst_7 {dimension_numbers = #tpu.dot_dimension_numbers<[1], [0], [0], [1], [0, 0, 1, 1], [], []>} : vector<32x16xf32>, vector<16x32xf32>, vector<32x32xf32> -> vector<32x32xf32>
    %c0_8 = arith.constant 0 : index
    %c0_9 = arith.constant 0 : index
    %c0_10 = arith.constant 0 : index
    %c0_11 = arith.constant 0 : index
    %6 = vector.load %arg4[%c0_8, %c0_9, %c0_10, %c0_11] : memref<2x1x32x32xf32, #tpu.memory_space<vmem>>, vector<1x1x32x32xf32>
    %7 = vector.shape_cast %6 : vector<1x1x32x32xf32> to vector<32x32xf32>
    %8 = vector.shape_cast %5 : vector<32x32xf32> to vector<1x1x32x32xf32>
    tpu.vector_store %arg4[%c0_8, %c0_9, %c0_10, %c0_11], %8 {strides = array<i32>} : memref<2x1x32x32xf32, #tpu.memory_space<vmem>>, vector<1x1x32x32xf32>,
    %c1 = arith.constant 1 : index
    %c0_12 = arith.constant 0 : index
    %c0_13 = arith.constant 0 : index
    %c0_14 = arith.constant 0 : index
    %9 = vector.load %arg1[%c1, %c0_12, %c0_13, %c0_14] : memref<2x1x16x16xf32, #tpu.memory_space<vmem>>, vector<1x1x16x16xf32>
    %10 = vector.shape_cast %9 : vector<1x1x16x16xf32> to vector<16x16xf32>
    %cst_15 = arith.constant dense<0.000000e+00> : vector<16x32xf32>
    %11 = tpu.matmul %10, %1, %cst_15 {dimension_numbers = #tpu.dot_dimension_numbers<[1], [0], [0], [1], [0, 0, 1, 1], [], []>} : vector<16x16xf32>, vector<16x32xf32>, vector<16x32xf32> -> vector<16x32xf32>
    %cst_16 = arith.constant dense<0.000000e+00> : vector<32x32xf32>
    %12 = tpu.matmul %0, %11, %cst_16 {dimension_numbers = #tpu.dot_dimension_numbers<[1], [0], [0], [1], [0, 0, 1, 1], [], []>} : vector<32x16xf32>, vector<16x32xf32>, vector<32x32xf32> -> vector<32x32xf32>
    %c1_17 = arith.constant 1 : index
    %c0_18 = arith.constant 0 : index
    %c0_19 = arith.constant 0 : index
    %c0_20 = arith.constant 0 : index
    %13 = vector.load %arg4[%c1_17, %c0_18, %c0_19, %c0_20] : memref<2x1x32x32xf32, #tpu.memory_space<vmem>>, vector<1x1x32x32xf32>
    %14 = vector.shape_cast %13 : vector<1x1x32x32xf32> to vector<32x32xf32>
    %15 = vector.shape_cast %12 : vector<32x32xf32> to vector<1x1x32x32xf32>
    tpu.vector_store %arg4[%c1_17, %c0_18, %c0_19, %c0_20], %15 {strides = array<i32>} : memref<2x1x32x32xf32, #tpu.memory_space<vmem>>, vector<1x1x32x32xf32>,
    return
  }
  func.func @transform_0(%arg0: i32) -> (i32, i32, i32, i32) {
    %c0_i32 = arith.constant 0 : i32
    %c0_i32_0 = arith.constant 0 : i32
    %c0_i32_1 = arith.constant 0 : i32
    %c0_i32_2 = arith.constant 0 : i32
    return %arg0, %c0_i32, %c0_i32_0, %c0_i32_1 : i32, i32, i32, i32
  }
  func.func @transform_1(%arg0: i32) -> (i32, i32) {
    %c0_i32 = arith.constant 0 : i32
    %c0_i32_0 = arith.constant 0 : i32
    %c0_i32_1 = arith.constant 0 : i32
    return %c0_i32, %c0_i32_0 : i32, i32
  }
  func.func @transform_2(%arg0: i32) -> (i32, i32) {
    %c0_i32 = arith.constant 0 : i32
    %c0_i32_0 = arith.constant 0 : i32
    %c0_i32_1 = arith.constant 0 : i32
    return %c0_i32, %c0_i32_0 : i32, i32
  }
  func.func @transform_3(%arg0: i32) -> (i32, i32, i32, i32) {
    %c0_i32 = arith.constant 0 : i32
    %c0_i32_0 = arith.constant 0 : i32
    %c0_i32_1 = arith.constant 0 : i32
    %c0_i32_2 = arith.constant 0 : i32
    return %arg0, %c0_i32, %c0_i32_0, %c0_i32_1 : i32, i32, i32, i32
  }
}

</mosaic_0001>

<bundles_post_ra>
// kernel: _forward.2
= control target key start
LH: loop header
LB: loop body
LE: loop exit
PB: predicated region body
PF: predicated region fallthrough
CT: control target
= control target key end

     0   :  { %vm30_vm0 = vcmask 1043456   ;;  %s749_s0 = inlined_call_operand.vmem [shape: f32[2,4,256], index: 0, kind: input, shape index: {}]   ;;  %s750_s1 = inlined_call_operand.vmem [shape: f32[2,4,256], index: 1, kind: input, shape index: {}]   ;;  %s751_s2 = inlined_call_operand.vmem [shape: f32[2,1,256], index: 2, kind: output, shape index: {}]  }
   0x1   :  { %v11_v0 = vld [vmem:[%s749_s0] sm:$0xff]  ;;  %v12_v1 = vld [vmem:[%s749_s0 + $0x8] sm:$0xff] }
   0x2   :  { %v15_v2 = vmul.f32 %v11_v0, %v11_v0  ;;  %v16_v3 = vmul.f32 %v12_v1, %v12_v1  ;;  %v13_v4 = vld [vmem:[%s750_s1] sm:$0xff]  ;;  %v14_v6 = vld [vmem:[%s750_s1 + $0x8] sm:$0xff] }
   0x3   :  { %v59_v5 = vmul.f32 %v13_v4, %v13_v4  ;;  %v60_v7 = vmul.f32 %v14_v6, %v14_v6  ;;  %v102_v20 = vmul.f32 %v13_v4, %v11_v0  ;;  %v103_v28 = vmul.f32 %v14_v6, %v12_v1 }
   0x4   :  { %19 = vst [vmem:[#allocation1] ss:$2 sm:$0xff] %v15_v2 }
   0x5   :  { %23 = vst [vmem:[#allocation1 + $0x10] ss:$2 sm:$0xff] %v16_v3 }
   0xb   :  { %v20_v8 = vld.sshfl [vmem:[#allocation1] sm:$0xff pattern:$0x75316420]  ;;  %v21_v9 = vld.sshfl [vmem:[#allocation1 + $0x8] sm:$0xff pattern:$0x75316420] }
   0xc   :  { %v31_v10 = vsel %vm30_vm0, %v20_v8, 0.0  ;;  %v38_v11 = vsel %vm30_vm0, %v21_v9, 0.0  ;;  %63 = vst [vmem:[#allocation1] ss:$2 sm:$0xff] %v59_v5 }
   0xd   :  { %v32_v12 = vrot.slane %v31_v10, 4  ;;  %v39_v13 = vrot.slane %v38_v11, 4  ;;  %v24_v14 = vld.sshfl [vmem:[#allocation1 + $0x10] sm:$0xff pattern:$0x75316420] }
   0xe   :  { %v25_v15 = vld.sshfl [vmem:[#allocation1 + $0x18] sm:$0xff pattern:$0x75316420]  ;;  %v45_v16 = vsel %vm30_vm0, %v24_v14, 0.0 }
   0xf   :  { %v33_v17 = vadd.f32 %v32_v12, %v31_v10  ;;  %v40_v18 = vadd.f32 %v39_v13, %v38_v11  ;;  %v46_v19 = vrot.slane %v45_v16, 4  ;;  %67 = vst [vmem:[#allocation1 + $0x10] ss:$2 sm:$0xff] %v60_v7  ;;  %v52_v24 = vsel %vm30_vm0, %v25_v15, 0.0 }
  0x10   :  { %v53_v29 = vrot.slane %v52_v24, 4 }
  0x11   :  { %v34_v21 = vrot.slane %v33_v17, 2  ;;  %v41_v22 = vrot.slane %v40_v18, 2  ;;  %v47_v23 = vadd.f32 %v46_v19, %v45_v16 }
  0x12   :  { %v54_v42 = vadd.f32 %v53_v29, %v52_v24 }
  0x13   :  { %v35_v25 = vadd.f32 %v34_v21, %v33_v17  ;;  %v42_v26 = vadd.f32 %v41_v22, %v40_v18  ;;  %v64_v27 = vld.sshfl [vmem:[#allocation1] sm:$0xff pattern:$0x75316420]  ;;  %v65_v30 = vld.sshfl [vmem:[#allocation1 + $0x8] sm:$0xff pattern:$0x75316420] }
  0x14   :  { %v74_v31 = vsel %vm30_vm0, %v64_v27, 0.0  ;;  %v48_v34 = vrot.slane %v47_v23, 2  ;;  %106 = vst [vmem:[#allocation1] ss:$2 sm:$0xff] %v102_v20  ;;  %v81_v36 = vsel %vm30_vm0, %v65_v30, 0.0  ;;  %v55_v51 = vrot.slane %v54_v42, 2 }
  0x15   :  { %v36_v32 = vrot.slane %v35_v25, 1  ;;  %v43_v33 = vrot.slane %v42_v26, 1  ;;  %v75_v35 = vrot.slane %v74_v31, 4  ;;  %v82_v43 = vrot.slane %v81_v36, 4 }
  0x16   :  { %v68_v37 = vld.sshfl [vmem:[#allocation1 + $0x10] sm:$0xff pattern:$0x75316420]  ;;  %v69_v41 = vld.sshfl [vmem:[#allocation1 + $0x18] sm:$0xff pattern:$0x75316420]  ;;  %v49_v45 = vadd.f32 %v48_v34, %v47_v23  ;;  %v56_v61 = vadd.f32 %v55_v51, %v54_v42 }
  0x17   :  { %v491_v38 = vadd.f32 %v36_v32, %v35_v25  ;;  %v493_v39 = vadd.f32 %v43_v33, %v42_v26  ;;  %v76_v40 = vadd.f32 %v75_v35, %v74_v31  ;;  %v88_v44 = vsel %vm30_vm0, %v68_v37, 0.0  ;;  %110 = vst [vmem:[#allocation1 + $0x10] ss:$2 sm:$0xff] %v103_v28 }
  0x18   :  { %v83_v47 = vadd.f32 %v82_v43, %v81_v36  ;;  %v89_v49 = vrot.slane %v88_v44, 4  ;;  %v95_v50 = vsel %vm30_vm0, %v69_v41, 0.0  ;;  %v50_v53 = vrot.slane %v49_v45, 1 }
  0x19   :  { %426 = vrsqrt.f32 %v491_v38  ;;  %v77_v46 = vrot.slane %v76_v40, 2  ;;  %v96_v56 = vrot.slane %v95_v50, 4  ;;  %v57_v10 = vrot.slane %v56_v61, 1 }
  0x1a   :  { %428 = vrsqrt.f32 %v493_v39  ;;  %v84_v52 = vrot.slane %v83_v47, 2  ;;  %v90_v59 = vadd.f32 %v89_v49, %v88_v44  ;;  %v502_v1 = vadd.f32 %v50_v53, %v49_v45 }
  0x1b   :  { %v78_v48 = vadd.f32 %v77_v46, %v76_v40  ;;  %v107_v63 = vld.sshfl [vmem:[#allocation1] sm:$0xff pattern:$0x75316420]  ;;  %v108_v2 = vld.sshfl [vmem:[#allocation1 + $0x8] sm:$0xff pattern:$0x75316420]  ;;  %v97_v5 = vadd.f32 %v96_v56, %v95_v50  ;;  %v512_v21 = vadd.f32 %v57_v10, %v56_v61 }
  0x1c   :  { %v85_v55 = vadd.f32 %v84_v52, %v83_v47  ;;  %v91_v7 = vrot.slane %v90_v59, 2  ;;  %v117_v8 = vsel %vm30_vm0, %v107_v63, 0.0  ;;  %v124_v11 = vsel %vm30_vm0, %v108_v2, 0.0 }
  0x1d   :  { %v79_v54 = vrot.slane %v78_v48, 1  ;;  %v98_v14 = vrot.slane %v97_v5, 2  ;;  %v118_v15 = vrot.slane %v117_v8, 4  ;;  %v125_v19 = vrot.slane %v124_v11, 4 }
  0x1e   :  { %v86_v62 = vrot.slane %v85_v55, 1  ;;  %v92_v18 = vadd.f32 %v91_v7, %v90_v59  ;;  %vm152_vm1 = vcmp.eq.f32.partialorder %v491_v38, inf  ;;  %vm154_vm2 = vcmp.eq.f32.partialorder %v491_v38, 0.0 }
  0x1f   :  { %v427_v57 = vpop.eup %426  ;;  %v499_v58 = vadd.f32 %v79_v54, %v78_v48  ;;  %v155_v24 = vand.u32 2147483648, %v491_v38  ;;  %v99_v27 = vadd.f32 %v98_v14, %v97_v5  ;;  %v119_v28 = vadd.f32 %v118_v15, %v117_v8 }
  0x20   :  { %v429_v60 = vpop.eup %428  ;;  %v146_v0 = vmul.f32 %v427_v57, %v491_v38  ;;  %v506_v4 = vadd.f32 %v86_v62, %v85_v55  ;;  %v93_v32 = vrot.slane %v92_v18, 1  ;;  %v126_v33 = vadd.f32 %v125_v19, %v124_v11 }
  0x21   :  { %430 = vrsqrt.f32 %v499_v58  ;;  %v158_v3 = vmul.f32 %v429_v60, %v493_v39  ;;  %vm164_vm3 = vcmp.eq.f32.partialorder %v493_v39, inf  ;;  %v167_v37 = vand.u32 2147483648, %v493_v39 }
  0x22   :  { %v147_v6 = vmul.f32 %v427_v57, %v146_v0  ;;  %432 = vrsqrt.f32 %v506_v4  ;;  %vm166_vm4 = vcmp.eq.f32.partialorder %v493_v39, 0.0  ;;  %v100_v48 = vrot.slane %v99_v27, 1 }
  0x23   :  { %v159_v9 = vmul.f32 %v429_v60, %v158_v3  ;;  %434 = vrsqrt.f32 %v502_v1  ;;  %v120_v49 = vrot.slane %v119_v28, 2  ;;  %v536_v52 = vadd.f32 %v93_v32, %v92_v18 }
  0x24   :  { %v148_v12 = vmul.f32 0.5, %v147_v6  ;;  %v127_v53 = vrot.slane %v126_v33, 2  ;;  %vm264_vm5 = vcmp.eq.f32.partialorder %v499_v58, inf  ;;  %vm266_vm6 = vcmp.eq.f32.partialorder %v499_v58, 0.0 }
  0x25   :  { %v160_v13 = vmul.f32 0.5, %v159_v9  ;;  %v544_v59 = vadd.f32 %v120_v49, %v119_v28  ;;  %v267_v63 = vand.u32 2147483648, %v499_v58  ;;  %vm276_vm7 = vcmp.eq.f32.partialorder %v506_v4, inf }
  0x26   :  { %v149_v16 = vsub.f32 1.5, %v148_v12  ;;  %vm278_vm8 = vcmp.eq.f32.partialorder %v506_v4, 0.0  ;;  %v279_v10 = vand.u32 2147483648, %v506_v4  ;;  %vm176_vm15 = vcmp.eq.f32.partialorder %v502_v1, inf }
  0x27   :  { %v431_v17 = vpop.eup %430  ;;  %v161_v20 = vsub.f32 1.5, %v160_v13 }
  0x28   :  { %v150_v22 = vmul.f32 %v427_v57, %v149_v16  ;;  %v258_v23 = vmul.f32 %v431_v17, %v499_v58  ;;  %v433_v26 = vpop.eup %432  ;;  %v542_v57 = vadd.f32 %v100_v48, %v99_v27 }
  0x29   :  { %v162_v25 = vmul.f32 %v429_v60, %v161_v20  ;;  %v519_v31 = vpop.eup %434  ;;  %v270_v35 = vmul.f32 %v433_v26, %v506_v4  ;;  %v547_v60 = vadd.f32 %v127_v53, %v126_v33 }
  0x2a   :  { %v151_v29 = vmul.f32 %v150_v22, %v491_v38  ;;  %v259_v30 = vmul.f32 %v431_v17, %v258_v23  ;;  %v170_v47 = vmul.f32 %v519_v31, %v502_v1 }
  0x2b   :  { %v163_v34 = vmul.f32 %v162_v25, %v493_v39  ;;  %v271_v43 = vmul.f32 %v433_v26, %v270_v35  ;;  %v122_v25 = vrot.slane %v544_v59, 1 }
  0x2c   :  { %v153_v36 = vsel %vm152_vm1, %v491_v38, %v151_v29  ;;  %v260_v40 = vmul.f32 0.5, %v259_v30  ;;  %v171_v56 = vmul.f32 %v519_v31, %v170_v47  ;;  %vm178_vm1 = vcmp.eq.f32.partialorder %v502_v1, 0.0 }
  0x2d   :  { %v156_v41 = vsel %vm154_vm2, %v155_v24, %v153_v36  ;;  %v165_v42 = vsel %vm164_vm3, %v493_v39, %v163_v34  ;;  %v272_v51 = vmul.f32 0.5, %v271_v43  ;;  %v179_v47 = vand.u32 2147483648, %v502_v1 }
  0x2e   :  { %v168_v44 = vsel %vm166_vm4, %v167_v37, %v165_v42  ;;  %v530_v45 = vmax.f32 %v156_v41, 1e-12  ;;  %v261_v46 = vsub.f32 1.5, %v260_v40  ;;  %v172_v5 = vmul.f32 0.5, %v171_v56 }
  0x2f   :  { %v534_v50 = vmax.f32 %v168_v44, 1e-12  ;;  %v273_v55 = vsub.f32 1.5, %v272_v51 }
  0x30   :  { %436 = vrcp.f32 %v530_v45  ;;  %v262_v54 = vmul.f32 %v431_v17, %v261_v46  ;;  %v206_v8 = vand.u32 2147483647, %v530_v45  ;;  %v208_v12 = vand.u32 2147483648, %v530_v45 }
  0x31   :  { %438 = vrcp.f32 %v534_v50  ;;  %v274_v62 = vmul.f32 %v433_v26, %v273_v55  ;;  %v221_v17 = vand.u32 2147483647, %v534_v50  ;;  %v223_v18 = vand.u32 2147483648, %v534_v50 }
  0x32   :  { %440 = vrsqrt.f32 %v512_v21  ;;  %v263_v61 = vmul.f32 %v262_v54, %v499_v58  ;;  %v173_v24 = vsub.f32 1.5, %v172_v5  ;;  %vm202_vm9 = vweird.f32 %v530_v45 }
  0x33   :  { %442 = vrsqrt.f32 %v536_v52  ;;  %v275_v3 = vmul.f32 %v274_v62, %v506_v4  ;;  %vm584_vm11 = vcmp.eq.f32.partialorder %v206_v8, 8.507059e+37  ;;  %v209_v32 = vor.u32 1.1754944e-38, %v208_v12 }
  0x34   :  { %v265_v2 = vsel %vm264_vm5, %v499_v58, %v263_v61  ;;  %vm217_vm12 = vweird.f32 %v534_v50  ;;  %vm589_vm13 = vcmp.eq.f32.partialorder %v221_v17, 8.507059e+37  ;;  %v224_v34 = vor.u32 1.1754944e-38, %v223_v18 }
  0x35   :  { %v268_v9 = vsel %vm266_vm6, %v267_v63, %v265_v2  ;;  %v277_v14 = vsel %vm276_vm7, %v506_v4, %v275_v3  ;;  %v174_v36 = vmul.f32 %v519_v31, %v173_v24 }
  0x36   :  { %v437_v0 = vpop.eup %436  ;;  %v568_v15 = vmax.f32 %v268_v9, 1e-12  ;;  %v280_v19 = vsel %vm278_vm8, %v279_v10, %v277_v14 }
  0x37   :  { %v557_v6 = vpop.eup %438  ;;  %v198_v7 = vmul.f32 %v437_v0, %v530_v45  ;;  %v574_v23 = vmax.f32 %v280_v19, 1e-12  ;;  %vm203_vm10 = vweird.f32 %v437_v0  ;;  %v175_v31 = vmul.f32 %v174_v36, %v502_v1 }
  0x38   :  { %v562_v11 = vpop.eup %440  ;;  %v213_v13 = vmul.f32 %v557_v6, %v534_v50  ;;  %444 = vrcp.f32 %v568_v15  ;;  %v318_v35 = vand.u32 2147483647, %v568_v15  ;;  %vm595_vm14 = vmor %vm202_vm9, %vm203_vm10  ;;  %v320_v40 = vand.u32 2147483648, %v568_v15 }
  0x39   :  { %v199_v16 = vsub.f32 1.0, %v198_v7  ;;  %v572_v20 = vpop.eup %442  ;;  %446 = vrsqrt.f32 %v542_v57  ;;  %v182_v27 = vmul.f32 %v562_v11, %v512_v21  ;;  %vm218_vm2 = vweird.f32 %v557_v6 }
  0x3a   :  { %v214_v22 = vsub.f32 1.0, %v213_v13  ;;  %448 = vrcp.f32 %v574_v23  ;;  %vm314_vm3 = vweird.f32 %v568_v15  ;;  %vm329_vm4 = vweird.f32 %v574_v23  ;;  %vm626_vm6 = vmor %vm217_vm12, %vm218_vm2 }
  0x3b   :  { %v200_v26 = vmul.f32 %v437_v0, %v199_v16  ;;  %v183_v41 = vmul.f32 %v562_v11, %v182_v27  ;;  %vm614_vm5 = vcmp.eq.f32.partialorder %v318_v35, 8.507059e+37  ;;  %v333_v51 = vand.u32 2147483647, %v574_v23 }
  0x3c   :  { %v215_v28 = vmul.f32 %v557_v6, %v214_v22  ;;  %v177_v53 = vsel %vm176_vm15, %v502_v1, %v175_v31  ;;  %v321_v62 = vor.u32 1.1754944e-38, %v320_v40  ;;  %v282_v8 = vmul.f32 %v572_v20, %v536_v52  ;;  %v111_v31 = vld.sshfl [vmem:[#allocation1 + $0x10] sm:$0xff pattern:$0x75316420] }
  0x3d   :  { %v201_v29 = vadd.f32 %v437_v0, %v200_v26  ;;  %v184_v54 = vmul.f32 0.5, %v183_v41  ;;  %v180_v2 = vsel %vm178_vm1, %v179_v47, %v177_v53  ;;  %vm640_vm8 = vcmp.eq.f32.partialorder %v333_v51, 8.507059e+37 }
  0x3e   :  { %v445_v42 = vpop.eup %444  ;;  %v216_v44 = vadd.f32 %v557_v6, %v215_v28  ;;  %v636_v50 = vmax.f32 %v180_v2, 1e-12  ;;  %v335_v10 = vand.u32 2147483648, %v574_v23  ;;  %vm188_vm9 = vcmp.eq.f32.partialorder %v512_v21, inf }
  0x3f   :  { %v205_v43 = vsel %vm595_vm14, %v437_v0, %v201_v29  ;;  %v608_v45 = vpop.eup %446  ;;  %v310_v46 = vmul.f32 %v445_v42, %v568_v15  ;;  %vm315_vm7 = vweird.f32 %v445_v42  ;;  %v185_v3 = vsub.f32 1.5, %v184_v54 }
  0x40   :  { %v449_v48 = vpop.eup %448  ;;  %v210_v55 = vsel %vm584_vm11, %v209_v32, %v205_v43  ;;  %v220_v0 = vsel %vm626_vm6, %v557_v6, %v216_v44  ;;  %vm316_vm11 = vmor %vm314_vm3, %vm315_vm7  ;;  %450 = vrcp.f32 %v636_v50  ;;  %v191_v22 = vand.u32 2147483648, %v512_v21 }
  0x41   :  { %v311_v61 = vsub.f32 1.0, %v310_v46  ;;  %v325_v63 = vmul.f32 %v449_v48, %v574_v23  ;;  %v186_v6 = vmul.f32 %v562_v11, %v185_v3  ;;  %v225_v12 = vsel %vm589_vm13, %v224_v34, %v220_v0 }
  0x42   :  { %vm330_vm10 = vweird.f32 %v449_v48  ;;  %v369_v16 = vmul.f32 %v210_v55, %v491_v38  ;;  %v283_v11 = vmul.f32 %v572_v20, %v282_v8  ;;  %v294_v24 = vmul.f32 %v608_v45, %v542_v57 }
  0x43   :  { %v312_v5 = vmul.f32 %v445_v42, %v311_v61  ;;  %v326_v7 = vsub.f32 1.0, %v325_v63  ;;  %v187_v17 = vmul.f32 %v186_v6, %v512_v21  ;;  %vm331_vm12 = vmor %vm329_vm4, %vm330_vm10  ;;  %v336_v38 = vor.u32 1.1754944e-38, %v335_v10 }
  0x44   :  { %vm190_vm13 = vcmp.eq.f32.partialorder %v512_v21, 0.0  ;;  %v370_v28 = vmul.f32 %v225_v12, %v493_v39  ;;  %v284_v23 = vmul.f32 0.5, %v283_v11  ;;  %v295_v34 = vmul.f32 %v608_v45, %v294_v24 }
  0x45   :  { %v313_v13 = vadd.f32 %v445_v42, %v312_v5  ;;  %v327_v14 = vmul.f32 %v449_v48, %v326_v7  ;;  %v189_v15 = vsel %vm188_vm9, %v512_v21, %v187_v17  ;;  %v129_v35 = vrot.slane %v547_v60, 1  ;;  %v112_v5 = vld.sshfl [vmem:[#allocation1 + $0x18] sm:$0xff pattern:$0x75316420] }
  0x46   :  { %v192_v30 = vsel %vm190_vm13, %v191_v22, %v189_v15  ;;  %v373_v36 = vmul.f32 %v369_v16, %v210_v55  ;;  %v676_v41 = vpop.eup %450  ;;  %v416_v39 = vlaneseq  ;;  %v123_v46 = vadd.f32 %v122_v25, %v544_v59 }
  0x47   :  { %v317_v18 = vsel %vm316_vm11, %v445_v42, %v313_v13  ;;  %v328_v19 = vadd.f32 %v449_v48, %v327_v14  ;;  %v671_v33 = vmax.f32 %v192_v30, 1e-12  ;;  %v285_v47 = vsub.f32 1.5, %v284_v23 }
  0x48   :  { %v322_v26 = vsel %vm614_vm5, %v321_v62, %v317_v18  ;;  %v130_v49 = vadd.f32 %v129_v35, %v547_v60  ;;  %v228_v53 = vmul.f32 %v676_v41, %v636_v50  ;;  %vm411_vm14 = vcmask 1040384  }
  0x49   :  { %v332_v27 = vsel %vm331_vm12, %v449_v48, %v328_v19  ;;  %v377_v29 = vmul.f32 %v322_v26, %v499_v58  ;;  %452 = vrcp.f32 %v671_v33  ;;  %v374_v58 = vmul.f32 %v370_v28, %v225_v12 }
  0x4a   :  { %v337_v32 = vsel %vm640_vm8, %v336_v38, %v332_v27  ;;  %v296_v48 = vmul.f32 0.5, %v295_v34  ;;  %v393_v51 = vmul.f32 %v322_v26, %v210_v55  ;;  %v131_v54 = vsel %vm30_vm0, %v111_v31, 0.0 }
  0x4b   :  { %v378_v37 = vmul.f32 %v337_v32, %v506_v4  ;;  %v381_v40 = vmul.f32 %v377_v29, %v322_v26  ;;  %v394_v44 = vmul.f32 %v337_v32, %v225_v12  ;;  %v286_v56 = vmul.f32 %v572_v20, %v285_v47 }
  0x4c   :  { %v297_v61 = vsub.f32 1.5, %v296_v48  ;;  %vm687_vm15 = vcmp.lt.s32.totalorder %v416_v39, 256  ;;  %vm288_vm1 = vcmp.eq.f32.partialorder %v536_v52, inf  ;;  %v291_v55 = vand.u32 2147483648, %v536_v52 }
  0x4d   :  { %v382_v42 = vmul.f32 %v378_v37, %v337_v32  ;;  %v385_v43 = vadd.f32 %v381_v40, %v373_v36  ;;  %v398_v0 = vmul.f32 %v394_v44, %v130_v49  ;;  %v287_v60 = vmul.f32 %v286_v56, %v536_v52 }
  0x4e   :  { %v298_v2 = vmul.f32 %v608_v45, %v297_v61  ;;  %v397_v3 = vmul.f32 %v393_v51, %v123_v46  ;;  %v229_v7 = vsub.f32 1.0, %v228_v53  ;;  %vm290_vm2 = vcmp.eq.f32.partialorder %v536_v52, 0.0 }
  0x4f   :  { %v386_v4 = vadd.f32 %v382_v42, %v374_v58  ;;  %v389_v62 = vmul.f32 0.5, %v385_v43  ;;  %v691_v25 = vpop.eup %452  ;;  %v289_v9 = vsel %vm288_vm1, %v536_v52, %v287_v60  ;;  %vm300_vm3 = vcmp.eq.f32.partialorder %v542_v57, inf }
  0x50   :  { %v243_v8 = vmul.f32 %v691_v25, %v671_v33  ;;  %v299_v10 = vmul.f32 %v298_v2, %v542_v57  ;;  %v292_v13 = vsel %vm290_vm2, %v291_v55, %v289_v9  ;;  %v303_v45 = vand.u32 2147483648, %v542_v57 }
  0x51   :  { %v390_v63 = vmul.f32 0.5, %v386_v4  ;;  %v401_v6 = vsub.f32 %v389_v62, %v397_v3  ;;  %v138_v14 = vsel %vm30_vm0, %v112_v5, 0.0  ;;  %vm302_vm4 = vcmp.eq.f32.partialorder %v542_v57, 0.0 }
  0x52   :  { %v301_v16 = vsel %vm300_vm3, %v542_v57, %v299_v10  ;;  %v307_v17 = vmax.f32 %v292_v13, 1e-12  ;;  %v230_v18 = vmul.f32 %v676_v41, %v229_v7  ;;  %v244_v19 = vsub.f32 1.0, %v243_v8 }
  0x53   :  { %v402_v20 = vsub.f32 %v390_v63, %v398_v0  ;;  %v304_v22 = vsel %vm302_vm4, %v303_v45, %v301_v16  ;;  %v132_v24 = vrot.slane %v131_v54, 4  ;;  %v139_v38 = vrot.slane %v138_v14, 4 }
  0x54   :  { %v308_v26 = vmax.f32 %v304_v22, 1e-12  ;;  %454 = vrcp.f32 %v307_v17  ;;  %v231_v15 = vadd.f32 %v676_v41, %v230_v18  ;;  %vm233_vm0 = vweird.f32 %v676_v41 }
  0x55   :  { %v409_v12 = vrot.slane %v402_v20, 7  ;;  %v245_v27 = vmul.f32 %v691_v25, %v244_v19  ;;  %v133_v28 = vadd.f32 %v132_v24, %v131_v54  ;;  %v238_v29 = vand.u32 2147483648, %v636_v50 }
  0x56   :  { %456 = vrcp.f32 %v308_v26  ;;  %vm232_vm5 = vweird.f32 %v636_v50  ;;  %v236_v30 = vand.u32 2147483647, %v636_v50  ;;  %v140_v23 = vadd.f32 %v139_v38, %v138_v14 }
  0x57   :  { %v412_v11 = vsel %vm411_vm14, %v401_v6, %v409_v12  ;;  %vm720_vm6 = vmor %vm232_vm5, %vm233_vm0  ;;  %v246_v36 = vadd.f32 %v691_v25, %v245_v27  ;;  %vm248_vm7 = vweird.f32 %v691_v25  ;;  %v134_v39 = vrot.slane %v133_v28, 2 }
  0x58   :  { %420 = vst.msk [vmem:[%s751_s2] sm:$0x3] %vm687_vm15, %v412_v11  ;;  %v235_v35 = vsel %vm720_vm6, %v676_v41, %v231_v15  ;;  %v239_v58 = vor.u32 1.1754944e-38, %v238_v29  ;;  %v251_v50 = vand.u32 2147483647, %v671_v33  ;;  %v253_v42 = vand.u32 2147483648, %v671_v33 }
  0x59   :  { %vm237_vm8 = vcmp.eq.f32.partialorder %v236_v30, 8.507059e+37  ;;  %vm247_vm9 = vweird.f32 %v671_v33  ;;  %v141_v31 = vrot.slane %v140_v23, 2  ;;  %v348_v47 = vand.u32 2147483647, %v307_v17 }
  0x5a   :  { %v455_v32 = vpop.eup %454  ;;  %v240_v46 = vsel %vm237_vm8, %v239_v58, %v235_v35  ;;  %vm732_vm10 = vmor %vm247_vm9, %vm248_vm7  ;;  %v350_v48 = vand.u32 2147483648, %v307_v17  ;;  %vm252_vm12 = vcmp.eq.f32.partialorder %v251_v50, 8.507059e+37  ;;  %v254_v53 = vor.u32 1.1754944e-38, %v253_v42 }
  0x5b   :  { %v340_v37 = vmul.f32 %v455_v32, %v307_v17  ;;  %v250_v49 = vsel %vm732_vm10, %v691_v25, %v246_v36  ;;  %vm345_vm11 = vweird.f32 %v455_v32  ;;  %vm344_vm13 = vweird.f32 %v307_v17 }
  0x5c   :  { %v457_v40 = vpop.eup %456  ;;  %v365_v33 = vand.u32 2147483648, %v308_v26  ;;  %v363_v61 = vand.u32 2147483647, %v308_v26  ;;  %v142_v62 = vadd.f32 %v141_v31, %v140_v23  ;;  %v255_v63 = vsel %vm252_vm12, %v254_v53, %v250_v49  ;;  %vm346_vm2 = vmor %vm344_vm13, %vm345_vm11 }
  0x5d   :  { %v341_v43 = vsub.f32 1.0, %v340_v37  ;;  %v355_v44 = vmul.f32 %v457_v40, %v308_v26  ;;  %vm360_vm1 = vweird.f32 %v457_v40  ;;  %v351_v0 = vor.u32 1.1754944e-38, %v350_v48 }
  0x5e   :  { %v371_v60 = vmul.f32 %v240_v46, %v502_v1  ;;  %vm349_vm3 = vcmp.eq.f32.partialorder %v348_v47, 8.507059e+37  ;;  %vm359_vm4 = vweird.f32 %v308_v26  ;;  %v135_v2 = vadd.f32 %v134_v39, %v133_v28 }
  0x5f   :  { %v342_v4 = vmul.f32 %v455_v32, %v341_v43  ;;  %v356_v51 = vsub.f32 1.0, %v355_v44  ;;  %vm361_vm0 = vmor %vm359_vm4, %vm360_vm1  ;;  %v366_v20 = vor.u32 1.1754944e-38, %v365_v33  ;;  %vm364_vm5 = vcmp.eq.f32.partialorder %v363_v61, 8.507059e+37 }
  0x60   :  { %v372_v7 = vmul.f32 %v255_v63, %v512_v21  ;;  %v143_v10 = vrot.slane %v142_v62, 1  ;;  %v375_v6 = vmul.f32 %v371_v60, %v240_v46  ;;  %v136_v13 = vrot.slane %v135_v2, 1 }
  0x61   :  { %v343_v54 = vadd.f32 %v455_v32, %v342_v4  ;;  %v357_v56 = vmul.f32 %v457_v40, %v356_v51 }
  0x62   :  { %v376_v45 = vmul.f32 %v372_v7, %v255_v63  ;;  %v144_v11 = vadd.f32 %v143_v10, %v142_v62  ;;  %v137_v22 = vadd.f32 %v136_v13, %v135_v2 }
  0x63   :  { %v347_v55 = vsel %vm346_vm2, %v455_v32, %v343_v54  ;;  %v358_v25 = vadd.f32 %v457_v40, %v357_v56 }
  0x64   :  { %v352_v3 = vsel %vm349_vm3, %v351_v0, %v347_v55 }
  0x65   :  { %v362_v5 = vsel %vm361_vm0, %v457_v40, %v358_v25  ;;  %v379_v8 = vmul.f32 %v352_v3, %v536_v52  ;;  %v395_v19 = vmul.f32 %v352_v3, %v240_v46 }
  0x66   :  { %v367_v9 = vsel %vm364_vm5, %v366_v20, %v362_v5 }
  0x67   :  { %v380_v12 = vmul.f32 %v367_v9, %v542_v57  ;;  %v383_v1 = vmul.f32 %v379_v8, %v352_v3  ;;  %v396_v17 = vmul.f32 %v367_v9, %v255_v63  ;;  %v399_v38 = vmul.f32 %v395_v19, %v137_v22 }
  0x69   :  { %v384_v14 = vmul.f32 %v380_v12, %v367_v9  ;;  %v387_v16 = vadd.f32 %v383_v1, %v375_v6  ;;  %v400_v21 = vmul.f32 %v396_v17, %v144_v11 }
  0x6b   :  { %v388_v18 = vadd.f32 %v384_v14, %v376_v45  ;;  %v391_v24 = vmul.f32 0.5, %v387_v16 }
  0x6d   :  { %v392_v26 = vmul.f32 0.5, %v388_v18  ;;  %v403_v15 = vsub.f32 %v391_v24, %v399_v38 }
  0x6f   :  { %v404_v52 = vsub.f32 %v392_v26, %v400_v21 }
  0x71   :  { %v410_v27 = vrot.slane %v404_v52, 7 }
  0x73   :  { %v413_v28 = vsel %vm411_vm14, %v403_v15, %v410_v27 }
  0x74   :  { %421 = vst.msk [vmem:[%s751_s2 + $0x2] sm:$0x3] %vm687_vm15, %v413_v28 }

// kernel: _forward.3
= control target key start
LH: loop header
LB: loop body
LE: loop exit
PB: predicated region body
PF: predicated region fallthrough
CT: control target
= control target key end

     0   :  { %vm23_vm0 = vcmask 130048   ;;  %s306_s0 = inlined_call_operand.vmem [shape: f32[2,1,16,16], index: 0, kind: input, shape index: {}]   ;;  %s307_s1 = inlined_call_operand.vmem [shape: f32[32,16], index: 1, kind: input, shape index: {}]   ;;  %s308_s2 = inlined_call_operand.vmem [shape: f32[16,32], index: 2, kind: input, shape index: {}]   ;;  %s309_s3 = inlined_call_operand.hbm [shape: f32[2,1,32,32], index: 3, kind: output, shape index: {}]  }
   0x1   :  { %v20_v0 = vld [vmem:[%s308_s2 + $0x8] sm:$0xff]  ;;  %v19_v1 = vld [vmem:[%s308_s2] sm:$0xff]  ;;  %v189_v2 = vld [vmem:[%s306_s0 + $0x10] sm:$0xff] }
   0x2   :  { %122 = vmatpush.msra.mxu2 %v20_v0  ;;  %44 = vmatpush.msra.mxu0 %v20_v0  ;;  %v21_v3 = vld [vmem:[%s306_s0] sm:$0xff] }
   0x3   :  { %8 = vsyncpa [#allocation3], 0  ;;  %v190_v4 = vld [vmem:[%s306_s0 + $0x18] sm:$0xff]  ;;  %v22_v5 = vld [vmem:[%s306_s0 + $0x8] sm:$0xff]  ;;  %vm94_vm1 = vcmask 261120   ;;  %s171_s6 = sshll.u32 %s309_s3, 4  ;;  %s172_s6 = int_to_ptr.hbm [resolvable:$true] %s171_s6 }
   0x4   :  { %123 = vmatpush.msra.mxu2 %v19_v1  ;;  %45 = vmatpush.msra.mxu0 %v19_v1  ;;  %v16_v9 = vld [vmem:[%s307_s1 + $0x8] sm:$0xff]  ;;  %v15_v10 = vld [vmem:[%s307_s1] sm:$0xff]  ;;  %v17_v12 = vld [vmem:[%s307_s1 + $0x10] sm:$0xff]  ;;  %s231_s7 = smov 128   ;;  %s232_s8 = smov 8  }
   0x5   :  { %191 = vmatmul.msk.f32.vlgmr.msra.gmra.mxu2 %vm23_vm0, %v189_v2  ;;  %183 = vmatmul.msk.f32.vlgmr.msra.gmra.mxu0 %vm23_vm0, %v21_v3  ;;  %v18_v13 = vld [vmem:[%s307_s1 + $0x18] sm:$0xff]  ;;  %s230_s1 = smov [#allocation2]  }
   0x6   :  { %s169_s30 = sshll.u32 %s230_s1, 4  ;;  %s170_s30 = int_to_ptr.vmem [resolvable:$true] %s169_s30 }
   0xd   :  { %192 = vmatmul.msk.f32.gmra.mxu2 %vm23_vm0, %v190_v4  ;;  %184 = vmatmul.msk.f32.gmra.mxu0 %vm23_vm0, %v22_v5 }
  0x82   :  { %v47_v6 = vpop.f32.mrf.mxu0 }
  0x88   :  { %v125_v7 = vpop.f32.mrf.mxu2 }
  0x8a   :  { %v50_v8 = vpop.f32.mrf.mxu0 }
  0x8b   :  { %79 = vmatpush.msrb.mxu0 %v50_v8  ;;  %197 = vmatpush.msra.mxu1 %v50_v8 }
  0x8d   :  { %80 = vmatpush.msrb.mxu0 %v47_v6  ;;  %198 = vmatpush.msra.mxu1 %v47_v6 }
  0x8e   :  { %186 = vmatmul.msk.f32.vlgmr.msra.gmra.mxu1 %vm23_vm0, %v16_v9  ;;  %185 = vmatmul.msk.f32.vlgmr.msrb.gmra.mxu0 %vm23_vm0, %v15_v10 }
  0x90   :  { %v128_v11 = vpop.f32.mrf.mxu2 }
  0x91   :  { %145 = vmatpush.msrb.mxu2 %v128_v11  ;;  %199 = vmatpush.msra.mxu3 %v128_v11 }
  0x93   :  { %146 = vmatpush.msrb.mxu2 %v125_v7  ;;  %200 = vmatpush.msra.mxu3 %v125_v7 }
  0x94   :  { %194 = vmatmul.msk.f32.vlgmr.msra.gmra.mxu3 %vm23_vm0, %v16_v9  ;;  %193 = vmatmul.msk.f32.vlgmr.msrb.gmra.mxu2 %vm23_vm0, %v15_v10 }
  0x96   :  { %187 = vmatmul.msk.f32.gmra.mxu1 %vm23_vm0, %v17_v12 }
  0x9c   :  { %195 = vmatmul.msk.f32.gmra.mxu3 %vm23_vm0, %v17_v12 }
  0x9e   :  { %188 = vmatmul.msk.f32.gmra.mxu1 %vm23_vm0, %v18_v13 }
  0xa4   :  { %196 = vmatmul.msk.f32.gmra.mxu3 %vm23_vm0, %v18_v13 }
 0x10b   :  { %v85_v14 = vpop.f32.mrf.mxu1  ;;  %v82_v15 = vpop.f32.mrf.mxu0 }
 0x10c   :  { %96 = vst.msk [vmem:[#allocation2 + $0x8] sm:$0xff] %vm94_vm1, %v85_v14 }
 0x10d   :  { %95 = vst.msk [vmem:[#allocation2] sm:$0xff] %vm94_vm1, %v82_v15 }
 0x113   :  { %v88_v16 = vpop.f32.mrf.mxu1 }
 0x114   :  { %97 = vst.msk [vmem:[#allocation2 + $0x10] sm:$0xff] %vm94_vm1, %v88_v16 }
 0x117   :  { %v151_v17 = vpop.f32.mrf.mxu3  ;;  %v148_v18 = vpop.f32.mrf.mxu2 }
 0x118   :  { %162 = vst.msk [vmem:[#allocation2 + $0x28] sm:$0xff] %vm94_vm1, %v151_v17 }
 0x119   :  { %161 = vst.msk [vmem:[#allocation2 + $0x20] sm:$0xff] %vm94_vm1, %v148_v18 }
 0x11b   :  { %v91_v19 = vpop.f32.mrf.mxu1 }
 0x11c   :  { %98 = vst.msk [vmem:[#allocation2 + $0x18] sm:$0xff] %vm94_vm1, %v91_v19 }
 0x11f   :  { %v154_v20 = vpop.f32.mrf.mxu3 }
 0x120   :  { %163 = vst.msk [vmem:[#allocation2 + $0x30] sm:$0xff] %vm94_vm1, %v154_v20 }
 0x127   :  { %v157_v21 = vpop.f32.mrf.mxu3 }
 0x128   :  { %164 = vst.msk [vmem:[#allocation2 + $0x38] sm:$0xff] %vm94_vm1, %v157_v21 }
 0x129   :  { %177 = dma.vmem_to_hbm [thread:$0]  %s170_s30, 1024, %s172_s6, [#allocation3], %s231_s7, %s231_s7, %s232_s8  }
 0x12a   :  { %228 = dma.done.wait [#allocation3], 1024  }
 0x12b   :  { %229 = vsyncadd [#allocation3], 4294966272 }
 0x12c   :  { %182 = vsyncpa [#allocation3], 1 }

</bundles_post_ra>
